<compile_context>
chip_gen: v7x
topology: tpu7x:2x2x1
jax: 0.10.0
libtpu: 0.0.40
codegen_flags: <defaults>
</compile_context>

<pallas_src>
import functools

import jax
import jax.numpy as jnp
from jax.experimental import pallas as pl
from jax.experimental.pallas import tpu as pltpu


DEPTH = 5          # 5 linear layers total: 13->50, 3x(50->50), 50->1
WIDTH = 50
INPUT_DIM = 13

IN_PAD = 16                      # input dim 13 padded to a sublane multiple
WIDTH_PAD = 128                  # hidden width padded to lane width
W4_ROW = IN_PAD + 3 * WIDTH_PAD  # row holding the final (width -> 1) weights (= 400)
W_ROWS = W4_ROW + 8              # 16 + 3*128 + 8 = 408 slab rows (8/16-aligned)
ROW_ALIGN = 16                   # batch-tile alignment valid for both f32 (8) and bf16 (16)


def _mlp_kernel(x_ref, w_ref, b_ref, o_ref):
    f32 = jnp.float32
    b = b_ref[...]                                        # (8, 128) f32, resident

    # layer 0: (TILE_B, 16) @ (16, 128) + b0, ReLU  (f32 accumulation)
    h = jnp.dot(x_ref[...], w_ref[0:IN_PAD, :], preferred_element_type=f32)
    h = jnp.maximum(h + b[0:1, :], 0.0)

    # hidden layers 1..3: (TILE_B, 128) @ (128, 128) + b, ReLU (f32 accumulation;
    # LHS cast to the weight dtype so the bf16 path feeds the MXU natively)
    for li in range(3):
        off = IN_PAD + li * WIDTH_PAD
        w = w_ref[off:off + WIDTH_PAD, :]
        h = jnp.dot(h.astype(w.dtype), w, preferred_element_type=f32)
        h = jnp.maximum(h + b[li + 1:li + 2, :], 0.0)

    # final layer (width -> 1): VPU multiply + lane reduction instead of an N=1 MXU pass.
    # Padded columns of h and w4 are exactly zero, so the reduction is exact.
    w4 = w_ref[W4_ROW:W4_ROW + 1, :].astype(f32)          # (1, 128)
    out = jnp.sum(h * w4, axis=-1, keepdims=True) + b[4:5, 0:1]
    o_ref[...] = out.astype(o_ref.dtype)


def _round_up(n, m):
    return ((n + m - 1) // m) * m


def _cdiv(a, b):
    return -(-a // b)


def pack_params(params, param_dtype=jnp.bfloat16):
    """Pack 5 (w, b) pairs into one lane-dense weight slab + one f32 bias slab.

    params[i] = (w_i, b_i) with w_i of shape (in_features, out_features)
    (already transposed relative to torch.nn.Linear.weight) and b_i of shape
    (1, out_features).  Weights may be bf16 (default: fast MXU path on all
    generations); biases and matmul accumulation always stay f32.
    Note: in the bf16 path the streaming input x is also cast to bf16.
    """
    (w0, b0), (w1, b1), (w2, b2), (w3, b3), (w4, b4) = params

    w_slab = jnp.zeros((W_ROWS, WIDTH_PAD), jnp.float32)
    w_slab = w_slab.at[:INPUT_DIM, :WIDTH].set(w0.astype(jnp.float32))
    off = IN_PAD
    for w in (w1, w2, w3):
        w_slab = w_slab.at[off:off + WIDTH, :WIDTH].set(w.astype(jnp.float32))
        off += WIDTH_PAD
    w_slab = w_slab.at[W4_ROW, :WIDTH].set(w4.astype(jnp.float32)[:, 0])

    b_slab = jnp.zeros((8, WIDTH_PAD), jnp.float32)
    for i, bi in enumerate((b0, b1, b2, b3)):
        b_slab = b_slab.at[i, :WIDTH].set(bi.astype(jnp.float32).reshape(-1))
    b_slab = b_slab.at[4, 0].set(b4.astype(jnp.float32).reshape(-1)[0])

    return w_slab.astype(param_dtype), b_slab


def _choose_tiling(batch, tile_b):
    """Pick (tile_b, padded_b, n_steps): tile is a ROW_ALIGN multiple, padding
    waste stays below n_steps * ROW_ALIGN rows (no padding up to a big-tile multiple)."""
    min_padded = _round_up(batch, ROW_ALIGN)
    tile_b = max(ROW_ALIGN, _round_up(min(int(tile_b), min_padded), ROW_ALIGN))
    n_steps = _cdiv(min_padded, tile_b)
    tile_b = _round_up(_cdiv(batch, n_steps), ROW_ALIGN)   # re-balance tiles across steps
    padded_b = n_steps * tile_b
    return tile_b, padded_b, n_steps


@functools.partial(jax.jit, static_argnames=("tile_b",))
def bhp_fcnn_forward(x, w_slab, b_slab, *, tile_b=4096):
    """x: (B, ...) with prod(...) == input_dim (flattened like torch's x.view)."""
    batch = x.shape[0]
    x2d = x.reshape(batch, INPUT_DIM)          # fails loudly if sizes don't match

    tb, padded_b, n_steps = _choose_tiling(batch, tile_b)

    # Single fusable pad+cast (no zeros+scatter copy of x).
    xp = jnp.pad(x2d.astype(w_slab.dtype),
                 ((0, padded_b - batch), (0, IN_PAD - INPUT_DIM)))

    itemsize = jnp.dtype(w_slab.dtype).itemsize
    cost = pl.CostEstimate(
        flops=2 * padded_b * (IN_PAD * WIDTH_PAD + 3 * WIDTH_PAD * WIDTH_PAD + WIDTH_PAD),
        transcendentals=0,
        bytes_accessed=(xp.size * itemsize + w_slab.size * itemsize
                        + b_slab.size * 4 + padded_b * 4),
    )

    out = pl.pallas_call(
        _mlp_kernel,
        out_shape=jax.ShapeDtypeStruct((padded_b, 1), jnp.float32),
        grid=(n_steps,),
        in_specs=[
            pl.BlockSpec((tb, IN_PAD), lambda i: (i, 0)),          # x: pipelined per tile
            pl.BlockSpec((W_ROWS, WIDTH_PAD), lambda i: (0, 0)),   # weights: resident, 1 DMA
            pl.BlockSpec((8, WIDTH_PAD), lambda i: (0, 0)),        # biases: resident, 1 DMA
        ],
        out_specs=pl.BlockSpec((tb, 1), lambda i: (i, 0)),
        compiler_params=pltpu.CompilerParams(
            dimension_semantics=("parallel",),       # megacore-shard batch tiles on v7x
            vmem_limit_bytes=32 * 1024 * 1024,       # plenty for tile_b<=16k, safe on v7x
        ),
        cost_estimate=cost,
    )(xp, w_slab, b_slab)
    return out[:batch]


def init_params(key, depth=DEPTH, width=WIDTH, input_dim=INPUT_DIM):
    """PyTorch nn.Linear-style init (uniform +/- 1/sqrt(fan_in)).
    Weights stored as (in_features, out_features); biases as (1, out_features)."""
    dims = [input_dim] + [width] * (depth - 1) + [1]
    params = []
    for i in range(len(dims) - 1):
        fan_in, fan_out = dims[i], dims[i + 1]
        key, kw, kb = jax.random.split(key, 3)
        bound = 1.0 / jnp.sqrt(jnp.float32(fan_in))
        w = jax.random.uniform(kw, (fan_in, fan_out), jnp.float32, -bound, bound)
        b = jax.random.uniform(kb, (1, fan_out), jnp.float32, -bound, bound)
        params.append((w, b))
    return params


def reference_forward(x, params):
    h = x.reshape(x.shape[0], INPUT_DIM)
    n = len(params)
    for i, (w, b) in enumerate(params):
        h = h @ w + b
        if i < n - 1:
            h = jnp.maximum(h, 0.0)
    return h


if __name__ == "__main__":
    key = jax.random.PRNGKey(0)
    key, kx, kx2 = jax.random.split(key, 3)

    params = init_params(jax.random.PRNGKey(0))

    # Small batch, single tile.
    batch = 8
    x = jax.random.normal(kx, (batch, INPUT_DIM), jnp.float32)
    ref = reference_forward(x, params)

    # Default bf16 weight/activation fast path (f32 bias + accumulation).
    w_bf16, b_bf = pack_params(params)                       # default = bf16
    out_bf = jax.block_until_ready(bhp_fcnn_forward(x, w_bf16, b_bf))
    assert out_bf.shape == (batch, 1), out_bf.shape
    assert jnp.allclose(out_bf, ref, atol=5e-2, rtol=5e-2), (out_bf, ref)

    # f32 path (closest to PyTorch f32 semantics; MXU still accumulates via bf16 passes).
    w_f32, b_f32 = pack_params(params, jnp.float32)
    out = jax.block_until_ready(bhp_fcnn_forward(x, w_f32, b_f32))
    assert out.shape == (batch, 1), out.shape
    assert jnp.allclose(out, ref, atol=1e-4, rtol=1e-4), (out, ref)

    # Exercise the multi-tile grid path (small tile forced so several grid steps run).
    batch2 = 200
    x2 = jax.random.normal(kx2, (batch2, INPUT_DIM), jnp.float32)
    ref2 = reference_forward(x2, params)
    out2 = jax.block_until_ready(bhp_fcnn_forward(x2, w_f32, b_f32, tile_b=64))
    assert out2.shape == (batch2, 1), out2.shape
    assert jnp.allclose(out2, ref2, atol=1e-4, rtol=1e-4)

    print("KERNEL_OK")
</pallas_src>

<mosaic_0001>
module attributes {stable_mosaic.version = 11 : i64} {
  func.func @_mlp_kernel(%arg0: i32, %arg1: memref<16x16xbf16, #tpu.memory_space<vmem>>, %arg2: memref<408x128xbf16, #tpu.memory_space<vmem>>, %arg3: memref<8x128xf32, #tpu.memory_space<vmem>>, %arg4: memref<16x1xf32, #tpu.memory_space<vmem>>) attributes {dimension_semantics = [#tpu.dimension_semantics<parallel>], iteration_bounds = array<i64: 1>, scalar_prefetch = 0 : i64, scratch_operands = 0 : i64, tpu.core_type = #tpu.core_type<tc>, window_params = [{transform_indices = @transform_0, window_bounds = array<i64: 16, 16>}, {pipeline_mode = #tpu.pipeline_mode<synchronous>, transform_indices = @transform_1, window_bounds = array<i64: 408, 128>}, {pipeline_mode = #tpu.pipeline_mode<synchronous>, transform_indices = @transform_2, window_bounds = array<i64: 8, 128>}, {transform_indices = @transform_3, window_bounds = array<i64: 16, 1>}]} {
    %c0 = arith.constant 0 : index
    %c0_0 = arith.constant 0 : index
    %0 = vector.load %arg3[%c0, %c0_0] : memref<8x128xf32, #tpu.memory_space<vmem>>, vector<8x128xf32>
    %c0_1 = arith.constant 0 : index
    %c0_2 = arith.constant 0 : index
    %1 = vector.load %arg1[%c0_1, %c0_2] : memref<16x16xbf16, #tpu.memory_space<vmem>>, vector<16x16xbf16>
    %c0_3 = arith.constant 0 : index
    %c0_4 = arith.constant 0 : index
    %2 = vector.load %arg2[%c0_3, %c0_4] : memref<408x128xbf16, #tpu.memory_space<vmem>>, vector<16x128xbf16>
    %cst = arith.constant dense<0.000000e+00> : vector<16x128xf32>
    %3 = tpu.matmul %1, %2, %cst {dimension_numbers = #tpu.dot_dimension_numbers<[1], [0], [0], [1], [0, 0, 1, 1], [], []>} : vector<16x16xbf16>, vector<16x128xbf16>, vector<16x128xf32> -> vector<16x128xf32>
    %4 = vector.extract_strided_slice %0 {offsets = [0, 0], sizes = [1, 128], strides = [1, 1]} : vector<8x128xf32> to vector<1x128xf32>
    %5 = vector.broadcast %4 : vector<1x128xf32> to vector<16x128xf32>
    %6 = arith.addf %3, %5 : vector<16x128xf32>
    %cst_5 = arith.constant 0.000000e+00 : f32
    %7 = vector.broadcast %cst_5 : f32 to vector<16x128xf32>
    %8 = arith.maximumf %6, %7 : vector<16x128xf32>
    %c16 = arith.constant 16 : index
    %c0_6 = arith.constant 0 : index
    %9 = vector.load %arg2[%c16, %c0_6] : memref<408x128xbf16, #tpu.memory_space<vmem>>, vector<128x128xbf16>
    %10 = arith.truncf %8 : vector<16x128xf32> to vector<16x128xbf16>
    %cst_7 = arith.constant dense<0.000000e+00> : vector<16x128xf32>
    %11 = tpu.matmul %10, %9, %cst_7 {dimension_numbers = #tpu.dot_dimension_numbers<[1], [0], [0], [1], [0, 0, 1, 1], [], []>} : vector<16x128xbf16>, vector<128x128xbf16>, vector<16x128xf32> -> vector<16x128xf32>
    %12 = vector.extract_strided_slice %0 {offsets = [1, 0], sizes = [1, 128], strides = [1, 1]} : vector<8x128xf32> to vector<1x128xf32>
    %13 = vector.broadcast %12 : vector<1x128xf32> to vector<16x128xf32>
    %14 = arith.addf %11, %13 : vector<16x128xf32>
    %cst_8 = arith.constant 0.000000e+00 : f32
    %15 = vector.broadcast %cst_8 : f32 to vector<16x128xf32>
    %16 = arith.maximumf %14, %15 : vector<16x128xf32>
    %c144 = arith.constant 144 : index
    %c0_9 = arith.constant 0 : index
    %17 = vector.load %arg2[%c144, %c0_9] : memref<408x128xbf16, #tpu.memory_space<vmem>>, vector<128x128xbf16>
    %18 = arith.truncf %16 : vector<16x128xf32> to vector<16x128xbf16>
    %cst_10 = arith.constant dense<0.000000e+00> : vector<16x128xf32>
    %19 = tpu.matmul %18, %17, %cst_10 {dimension_numbers = #tpu.dot_dimension_numbers<[1], [0], [0], [1], [0, 0, 1, 1], [], []>} : vector<16x128xbf16>, vector<128x128xbf16>, vector<16x128xf32> -> vector<16x128xf32>
    %20 = vector.extract_strided_slice %0 {offsets = [2, 0], sizes = [1, 128], strides = [1, 1]} : vector<8x128xf32> to vector<1x128xf32>
    %21 = vector.broadcast %20 : vector<1x128xf32> to vector<16x128xf32>
    %22 = arith.addf %19, %21 : vector<16x128xf32>
    %cst_11 = arith.constant 0.000000e+00 : f32
    %23 = vector.broadcast %cst_11 : f32 to vector<16x128xf32>
    %24 = arith.maximumf %22, %23 : vector<16x128xf32>
    %c272 = arith.constant 272 : index
    %c0_12 = arith.constant 0 : index
    %25 = vector.load %arg2[%c272, %c0_12] : memref<408x128xbf16, #tpu.memory_space<vmem>>, vector<128x128xbf16>
    %26 = arith.truncf %24 : vector<16x128xf32> to vector<16x128xbf16>
    %cst_13 = arith.constant dense<0.000000e+00> : vector<16x128xf32>
    %27 = tpu.matmul %26, %25, %cst_13 {dimension_numbers = #tpu.dot_dimension_numbers<[1], [0], [0], [1], [0, 0, 1, 1], [], []>} : vector<16x128xbf16>, vector<128x128xbf16>, vector<16x128xf32> -> vector<16x128xf32>
    %28 = vector.extract_strided_slice %0 {offsets = [3, 0], sizes = [1, 128], strides = [1, 1]} : vector<8x128xf32> to vector<1x128xf32>
    %29 = vector.broadcast %28 : vector<1x128xf32> to vector<16x128xf32>
    %30 = arith.addf %27, %29 : vector<16x128xf32>
    %cst_14 = arith.constant 0.000000e+00 : f32
    %31 = vector.broadcast %cst_14 : f32 to vector<16x128xf32>
    %32 = arith.maximumf %30, %31 : vector<16x128xf32>
    %c400 = arith.constant 400 : index
    %c0_15 = arith.constant 0 : index
    %33 = vector.load %arg2[%c400, %c0_15] : memref<408x128xbf16, #tpu.memory_space<vmem>>, vector<1x128xbf16>
    %34 = arith.extf %33 : vector<1x128xbf16> to vector<1x128xf32>
    %35 = vector.broadcast %34 : vector<1x128xf32> to vector<16x128xf32>
    %36 = arith.mulf %32, %35 : vector<16x128xf32>
    %cst_16 = arith.constant dense<0.000000e+00> : vector<16xf32>
    %37 = vector.multi_reduction <add>, %36, %cst_16 [1] : vector<16x128xf32> to vector<16xf32>
    %38 = vector.shape_cast %37 : vector<16xf32> to vector<16x1xf32>
    %39 = vector.extract_strided_slice %0 {offsets = [4, 0], sizes = [1, 1], strides = [1, 1]} : vector<8x128xf32> to vector<1x1xf32>
    %40 = vector.broadcast %39 : vector<1x1xf32> to vector<16x1xf32>
    %41 = arith.addf %38, %40 : vector<16x1xf32>
    %c0_17 = arith.constant 0 : index
    %c0_18 = arith.constant 0 : index
    %42 = vector.load %arg4[%c0_17, %c0_18] : memref<16x1xf32, #tpu.memory_space<vmem>>, vector<16x1xf32>
    tpu.vector_store %arg4[%c0_17, %c0_18], %41 {strides = array<i32>} : memref<16x1xf32, #tpu.memory_space<vmem>>, vector<16x1xf32>,
    return
  }
  func.func @transform_0(%arg0: i32) -> (i32, i32) {
    %c0_i32 = arith.constant 0 : i32
    %c0_i32_0 = arith.constant 0 : i32
    return %arg0, %c0_i32 : i32, i32
  }
  func.func @transform_1(%arg0: i32) -> (i32, i32) {
    %c0_i32 = arith.constant 0 : i32
    %c0_i32_0 = arith.constant 0 : i32
    %c0_i32_1 = arith.constant 0 : i32
    return %c0_i32, %c0_i32_0 : i32, i32
  }
  func.func @transform_2(%arg0: i32) -> (i32, i32) {
    %c0_i32 = arith.constant 0 : i32
    %c0_i32_0 = arith.constant 0 : i32
    %c0_i32_1 = arith.constant 0 : i32
    return %c0_i32, %c0_i32_0 : i32, i32
  }
  func.func @transform_3(%arg0: i32) -> (i32, i32) {
    %c0_i32 = arith.constant 0 : i32
    %c0_i32_0 = arith.constant 0 : i32
    return %arg0, %c0_i32 : i32, i32
  }
}

</mosaic_0001>

<bundles_post_ra>
// kernel: bhp_fcnn_forward.1
= control target key start
LH: loop header
LB: loop body
LE: loop exit
PB: predicated region body
PF: predicated region fallthrough
CT: control target
= control target key end

     0   :  { %8 = vsyncpa [#allocation3], 0  ;;  %s635_s12 = smov [#allocation2]   ;;  %s735_s0 = inlined_call_operand.vmem [shape: bf16[16,16], index: 0, kind: input, shape index: {}]   ;;  %s736_s1 = inlined_call_operand.hbm [shape: bf16[408,128], index: 1, kind: input, shape index: {}]   ;;  %s737_s2 = inlined_call_operand.vmem [shape: f32[8,128], index: 2, kind: input, shape index: {}]   ;;  %s738_s3 = inlined_call_operand.vmem [shape: f32[16,1], index: 3, kind: output, shape index: {}]  }
   0x1   :  { %s16_s13 = sshll.u32 %s635_s12, 4  ;;  %s611_s16 = scalar_lea.hbm %s736_s1, 3264  ;;  %s17_s13 = int_to_ptr.vmem [resolvable:$true] %s16_s13 }
   0x2   :  { %p612_p0 = scmp.ne.s32.totalorder %s736_s1, %s611_s16  ;;  %p615_p1 = scmp.lt.u32.totalorder %s611_s16, %s736_s1 }
   0x4   :  { %p617_p2 = pnand %p615_p1, %p612_p0 }
   0x6   :  { %620 = shalt.err (!%p617_p2)
}
   0x7   :  { %s621_s21 = scalar_lea.vmem %s17_s13, 3264  ;;  %p626_p4 = scmp.lt.s32.totalorder %s17_s13, %s17_s13 }
   0x8   :  { %p622_p3 = scmp.ne.s32.totalorder %s17_s13, %s621_s21  ;;  %p627_p5 = scmp.lt.s32.totalorder %s621_s21, %s621_s21 }
   0xa   :  { %p628_p6 = por %p627_p5, %p626_p4 }
   0xc   :  { %p629_p7 = pnand %p628_p6, %p622_p3 }
   0xe   :  { %632 = shalt.err (!%p629_p7)
}
   0xf   :  { %s636_s22 = smov 64   ;;  %s637_s23 = smov 4  }
  0x10   :  { %22 = dma.hbm_to_vmem [thread:$0]  %s736_s1, 3264, %s17_s13, [#allocation3], %s636_s22, %s636_s22, %s637_s23  }
  0x11   :  { %633 = dma.done.wait [#allocation3], 3264  }
  0x12   :  { %634 = vsyncadd [#allocation3], 4294964032  ;;  %v638_v0 = vmov 0.0   ;;  %vm639_vm0 = vmmov 0   ;;  %v585_v1 = vld [vmem:[#allocation2] sm:$0xff]   ;;  %vm49_vm1 = vcmask 130048   ;;  %v34_v17 = vlaneseq }
  0x13   :  { %514 = vmatprep.subr.bf16.mxu0 %v638_v0  ;;  %516 = vmatprep.mubr.msk.bf16.mxu0 %vm639_vm0, %v638_v0  ;;  %v586_v2 = vld [vmem:[%s735_s0] sm:$0xff]   ;;  %v587_v3 = vld [vmem:[#allocation2 + $0x8] sm:$0xff]   ;;  %v588_v4 = vld [vmem:[#allocation2 + $0x10] sm:$0xff]   ;;  %vm450_vm2 = vcmask 7168  }
  0x14   :  { %520 = vmatprep.subr.bf16.mxu1 %v638_v0  ;;  %536 = vmatprep.mubr.msk.bf16.mxu1 %vm639_vm0, %v638_v0  ;;  %v589_v5 = vld [vmem:[#allocation2 + $0x18] sm:$0xff]   ;;  %v590_v6 = vld [vmem:[#allocation2 + $0x20] sm:$0xff]   ;;  %v591_v7 = vld [vmem:[#allocation2 + $0x28] sm:$0xff]   ;;  %v698_v18 = vshrl.u32 %v34_v17, 7 }
  0x15   :  { %515 = vmatpush3.bf16.msra.mxu0 %v585_v1  ;;  %521 = vmatpush3.bf16.msra.mxu1 %v587_v3  ;;  %v592_v8 = vld [vmem:[#allocation2 + $0x30] sm:$0xff]   ;;  %v593_v9 = vld [vmem:[#allocation2 + $0x38] sm:$0xff]   ;;  %v594_v10 = vld [vmem:[#allocation2 + $0x40] sm:$0xff]  }
  0x16   :  { %540 = vmatprep.subr.bf16.mxu0 %v638_v0  ;;  %522 = vmatprep.subr.bf16.mxu1 %v638_v0  ;;  %v595_v11 = vld [vmem:[#allocation2 + $0x48] sm:$0xff]   ;;  %v596_v12 = vld [vmem:[#allocation2 + $0x50] sm:$0xff]   ;;  %v597_v13 = vld [vmem:[#allocation2 + $0x58] sm:$0xff]   ;;  %v36_v19 = vsub.s32 0, %v698_v18  ;;  %v115_v39 = vsub.s32 1, %v698_v18  ;;  %v227_v52 = vsub.s32 2, %v698_v18 }
  0x17   :  { %v598_v14 = vld [vmem:[#allocation2 + $0x60] sm:$0xff]   ;;  %v599_v15 = vld [vmem:[#allocation2 + $0x68] sm:$0xff]   ;;  %v600_v16 = vld [vmem:[#allocation2 + $0x70] sm:$0xff]   ;;  %v339_v63 = vsub.s32 3, %v698_v18 }
  0x18   :  { %517 = vmatmul.mubr.msk.bf16.vlgmr.msra.gmra.mrb[0].mxu0 %vm49_vm1, %v586_v2  ;;  %v704_v20 = vld [vmem:[%s737_s2] sm:$0xff]  ;;  %v601_v31 = vld [vmem:[#allocation2 + $0x78] sm:$0xff]   ;;  %v603_v33 = vld [vmem:[#allocation2 + $0x88] sm:$0xff]  }
  0x19   :  { %556 = vmatprep.mubr.msk.bf16.mxu0 %vm639_vm0, %v638_v0  ;;  %523 = vmatpush3.bf16.msra.mxu1 %v588_v4  ;;  %v37_v21 = vrot.slane %v704_v20, %v36_v19  ;;  %v602_v32 = vld [vmem:[#allocation2 + $0x80] sm:$0xff]   ;;  %v604_v34 = vld [vmem:[#allocation2 + $0x90] sm:$0xff]   ;;  %v605_v35 = vld [vmem:[#allocation2 + $0x98] sm:$0xff]   ;;  %v116_v40 = vrot.slane %v704_v20, %v115_v39  ;;  %v228_v53 = vrot.slane %v704_v20, %v227_v52 }
  0x1a   :  { %524 = vmatprep.subr.bf16.mxu1 %v638_v0  ;;  %541 = vmatpush3.bf16.msra.mxu0 %v595_v11  ;;  %v606_v36 = vld [vmem:[#allocation2 + $0xa0] sm:$0xff]   ;;  %v607_v37 = vld [vmem:[#allocation2 + $0xa8] sm:$0xff]   ;;  %v608_v38 = vld [vmem:[#allocation2 + $0xb0] sm:$0xff]  }
  0x1b   :  { %542 = vmatprep.subr.bf16.mxu0 %v638_v0  ;;  %v609_v50 = vld [vmem:[#allocation2 + $0xb8] sm:$0xff]   ;;  %v610_v51 = vld [vmem:[#allocation2 + $0xc0] sm:$0xff]   ;;  %v432_v1 = vld [vmem:[#allocation2 + $0xc8] sm:$0x1] }
  0x1c   :  { %v433_v2 = vunpack.c.l.bf16 %v432_v1 }
  0x1d   :  { %525 = vmatpush3.bf16.msra.mxu1 %v589_v5 }
  0x1e   :  { %526 = vmatprep.subr.bf16.mxu1 %v638_v0  ;;  %543 = vmatpush3.bf16.msra.mxu0 %v596_v12 }
  0x1f   :  { %544 = vmatprep.subr.bf16.mxu0 %v638_v0 }
  0x21   :  { %527 = vmatpush3.bf16.msra.mxu1 %v590_v6  ;;  %v437_v6 = vrot.slane %v433_v2, %v36_v19 }
  0x22   :  { %528 = vmatprep.subr.bf16.mxu1 %v638_v0  ;;  %545 = vmatpush3.bf16.msra.mxu0 %v597_v13 }
  0x23   :  { %546 = vmatprep.subr.bf16.mxu0 %v638_v0 }
  0x25   :  { %529 = vmatpush3.bf16.msra.mxu1 %v591_v7 }
  0x26   :  { %530 = vmatprep.subr.bf16.mxu1 %v638_v0  ;;  %547 = vmatpush3.bf16.msra.mxu0 %v598_v14  ;;  %v446_v14 = vsub.s32 4, %v698_v18 }
  0x27   :  { %548 = vmatprep.subr.bf16.mxu0 %v638_v0 }
  0x29   :  { %531 = vmatpush3.bf16.msra.mxu1 %v592_v8 }
  0x2a   :  { %532 = vmatprep.subr.bf16.mxu1 %v638_v0  ;;  %549 = vmatpush3.bf16.msra.mxu0 %v599_v15  ;;  %v447_v15 = vrot.slane %v704_v20, %v446_v14 }
  0x2b   :  { %550 = vmatprep.subr.bf16.mxu0 %v638_v0 }
  0x2d   :  { %533 = vmatpush3.bf16.msra.mxu1 %v593_v9 }
  0x2e   :  { %534 = vmatprep.subr.bf16.mxu1 %v638_v0  ;;  %551 = vmatpush3.bf16.msra.mxu0 %v600_v16 }
  0x2f   :  { %552 = vmatprep.subr.bf16.mxu0 %v638_v0 }
  0x31   :  { %535 = vmatpush3.bf16.msra.mxu1 %v594_v10 }
  0x32   :  { %560 = vmatprep.subr.bf16.mxu1 %v638_v0  ;;  %553 = vmatpush3.bf16.msra.mxu0 %v601_v31 }
  0x33   :  { %554 = vmatprep.subr.bf16.mxu0 %v638_v0 }
  0x36   :  { %555 = vmatpush3.bf16.msra.mxu0 %v602_v32 }
  0xeb   :  { %v87_v22 = vpop.f32.mrb[0].mxu0 }
  0xec   :  { %v88_v23 = vadd.f32 %v87_v22, %v37_v21  ;;  %v518_v24 = vpop.f32.mrb[1].mxu0 }
  0xed   :  { %v90_v25 = vpop.f32.mrb[2].mxu0 }
  0xee   :  { %v91_v26 = vadd.f32 %v90_v25, %v37_v21  ;;  %v519_v27 = vpop.f32.mrb[3].mxu0  ;;  %v94_v28 = vmax.f32 %v88_v23, 0.0 }
  0xf0   :  { %v95_v29 = vmax.f32 %v91_v26, 0.0 }
  0xf2   :  { %v112_v30 = vpack.c.bf16 %v95_v29, %v94_v28 }
  0xf4   :  { %537 = vmatmul.mubr.bf16.vlgmr.msra.gmra.mrb[0].mxu1 %v112_v30 }
  0xf5   :  { %576 = vmatprep.mubr.msk.bf16.mxu1 %vm639_vm0, %v638_v0  ;;  %561 = vmatpush3.bf16.msra.mxu1 %v603_v33 }
  0xf6   :  { %562 = vmatprep.subr.bf16.mxu1 %v638_v0 }
  0xf9   :  { %563 = vmatpush3.bf16.msra.mxu1 %v604_v34 }
  0xfa   :  { %564 = vmatprep.subr.bf16.mxu1 %v638_v0 }
  0xfd   :  { %565 = vmatpush3.bf16.msra.mxu1 %v605_v35 }
  0xfe   :  { %566 = vmatprep.subr.bf16.mxu1 %v638_v0 }
 0x101   :  { %567 = vmatpush3.bf16.msra.mxu1 %v606_v36 }
 0x102   :  { %568 = vmatprep.subr.bf16.mxu1 %v638_v0 }
 0x105   :  { %569 = vmatpush3.bf16.msra.mxu1 %v607_v37 }
 0x106   :  { %570 = vmatprep.subr.bf16.mxu1 %v638_v0 }
 0x109   :  { %571 = vmatpush3.bf16.msra.mxu1 %v608_v38 }
 0x10a   :  { %572 = vmatprep.subr.bf16.mxu1 %v638_v0 }
 0x10d   :  { %573 = vmatpush3.bf16.msra.mxu1 %v609_v50 }
 0x10e   :  { %574 = vmatprep.subr.bf16.mxu1 %v638_v0  ;;  %v340_v0 = vrot.slane %v704_v20, %v339_v63 }
 0x111   :  { %575 = vmatpush3.bf16.msra.mxu1 %v610_v51 }
 0x1c7   :  { %v199_v41 = vpop.f32.mrb[0].mxu1 }
 0x1c8   :  { %v200_v42 = vadd.f32 %v199_v41, %v116_v40  ;;  %v538_v43 = vpop.f32.mrb[1].mxu1 }
 0x1c9   :  { %v202_v44 = vpop.f32.mrb[2].mxu1 }
 0x1ca   :  { %v203_v45 = vadd.f32 %v202_v44, %v116_v40  ;;  %v539_v46 = vpop.f32.mrb[3].mxu1  ;;  %v206_v47 = vmax.f32 %v200_v42, 0.0 }
 0x1cc   :  { %v207_v48 = vmax.f32 %v203_v45, 0.0 }
 0x1ce   :  { %v224_v49 = vpack.c.bf16 %v207_v48, %v206_v47 }
 0x1d0   :  { %557 = vmatmul.mubr.bf16.vlgmr.msra.gmra.mrb[4].mxu0 %v224_v49 }
 0x2a3   :  { %v311_v54 = vpop.f32.mrb[4].mxu0 }
 0x2a4   :  { %v312_v55 = vadd.f32 %v311_v54, %v228_v53  ;;  %v558_v56 = vpop.f32.mrb[5].mxu0 }
 0x2a5   :  { %v314_v57 = vpop.f32.mrb[6].mxu0 }
 0x2a6   :  { %v315_v58 = vadd.f32 %v314_v57, %v228_v53  ;;  %v559_v59 = vpop.f32.mrb[7].mxu0  ;;  %v318_v60 = vmax.f32 %v312_v55, 0.0 }
 0x2a8   :  { %v319_v61 = vmax.f32 %v315_v58, 0.0 }
 0x2aa   :  { %v336_v62 = vpack.c.bf16 %v319_v61, %v318_v60 }
 0x2ac   :  { %577 = vmatmul.mubr.bf16.vlgmr.msra.gmra.mrb[4].mxu1 %v336_v62 }
 0x37f   :  { %v423_v3 = vpop.f32.mrb[4].mxu1 }
 0x380   :  { %v424_v4 = vadd.f32 %v423_v3, %v340_v0  ;;  %v578_v5 = vpop.f32.mrb[5].mxu1 }
 0x381   :  { %v426_v7 = vpop.f32.mrb[6].mxu1 }
 0x382   :  { %v430_v8 = vmax.f32 %v424_v4, 0.0  ;;  %v427_v9 = vadd.f32 %v426_v7, %v340_v0  ;;  %v579_v10 = vpop.f32.mrb[7].mxu1 }
 0x384   :  { %v431_v11 = vmax.f32 %v427_v9, 0.0  ;;  %v438_v12 = vmul.f32 %v437_v6, %v430_v8 }
 0x386   :  { %440 = vadd.xlane.f32.xlu0 %v438_v12  ;;  %v439_v13 = vmul.f32 %v437_v6, %v431_v11 }
 0x38a   :  { %442 = vadd.xlane.f32.xlu0 %v439_v13 }
 0x413   :  { %v441_v16 = vpop.xlane.xlu0 %440 }
 0x414   :  { %v448_v17 = vadd.f32 %v447_v15, %v441_v16 }
 0x416   :  { %451 = vst.msk [vmem:[%s738_s3] sm:$0xff] %vm450_vm2, %v448_v17 }
 0x417   :  { %v443_v19 = vpop.xlane.xlu0 %442 }
 0x418   :  { %v449_v21 = vadd.f32 %v447_v15, %v443_v19 }
 0x41a   :  { %452 = vst.msk [vmem:[%s738_s3 + $0x8] sm:$0xff] %vm450_vm2, %v449_v21 }
 0x41b   :  { %457 = vsyncpa [#allocation3], 1 }

</bundles_post_ra>
